<compile_context>
chip_gen: v7x
topology: tpu7x:2x2x1
jax: 0.10.0
libtpu: 0.0.40
codegen_flags: <defaults>
</compile_context>

<pallas_src>
import functools

import jax
import jax.numpy as jnp
from jax import lax
from jax.experimental import pallas as pl
from jax.experimental.pallas import tpu as pltpu

LN_EPS = 1e-5
_VMEM_LIMIT = 56 * 1024 * 1024     # compiler cap (v7x-safe, fine on v5e/v6e)
_VMEM_BUDGET = 40 * 1024 * 1024    # working budget used to pick the row tile


def _round_up(x, m):
    return (x + m - 1) // m * m


def mm_encoder_kernel(v_ref, a_ref, t_ref, e_ref,
                      wv_ref, wa_ref, wt_ref, we_ref,
                      posb_ref, gamma_ref, beta_ref,
                      out_ref, *, true_h, compute_dtype):
    cd = compute_dtype
    # Four accumulating MXU matmuls into one f32 accumulator — equivalent to a
    # single projection over the concatenated feature axis, without the HBM
    # concat.  Activations are cast to the compute dtype here (VPU op, cheap).
    acc = jnp.dot(v_ref[...].astype(cd), wv_ref[...],
                  preferred_element_type=jnp.float32)
    acc += jnp.dot(a_ref[...].astype(cd), wa_ref[...],
                   preferred_element_type=jnp.float32)
    acc += jnp.dot(t_ref[...].astype(cd), wt_ref[...],
                   preferred_element_type=jnp.float32)
    acc += jnp.dot(e_ref[...].astype(cd), we_ref[...],
                   preferred_element_type=jnp.float32)
    # Positional encoding with the four linear biases pre-folded in.
    acc += posb_ref[...].astype(jnp.float32)

    # LayerNorm over the TRUE hidden size.  Padded lanes of `acc` are exactly
    # zero (zero-padded weights / pos_bias), so plain sums are already correct
    # -> no iota / mask / select needed.
    inv_h = 1.0 / float(true_h)
    mean = jnp.sum(acc, axis=-1, keepdims=True) * inv_h
    ex2 = jnp.sum(acc * acc, axis=-1, keepdims=True) * inv_h
    var = ex2 - mean * mean
    normed = (acc - mean) * lax.rsqrt(var + LN_EPS)
    # Zero-padded gamma / beta zero out the padded output lanes.
    out = normed * gamma_ref[...] + beta_ref[...]
    out_ref[...] = out.astype(out_ref.dtype)
    # TODO(synk): training-mode dropout would be applied here; eval semantics
    # (identity) are used.


def multimodal_encoder(visual, audio, text, engagement, params, *, ts=512,
                       compute_dtype=jnp.bfloat16, out_dtype=None):
    """visual: (B,S,Dv) audio: (B,S,Da) text: (B,S,Dt) engagement: (B,S,De)."""
    B, S, Dv = visual.shape
    Da = audio.shape[-1]
    Dt = text.shape[-1]
    De = engagement.shape[-1]
    H = params["ln_gamma"].shape[0]
    out_dtype = visual.dtype if out_dtype is None else out_dtype

    H_pad = _round_up(H, 128)          # lane-aligned hidden -> unmasked stores
    d_tot = Dv + Da + Dt + De

    # ---- tile size: big by default, shrunk against a VMEM working budget ----
    act_item = visual.dtype.itemsize
    prm_item = jnp.dtype(compute_dtype).itemsize
    out_item = jnp.dtype(out_dtype).itemsize
    while ts > 8:
        stream = 2 * ts * d_tot * act_item            # activation double-buffers
        stream += 2 * ts * H_pad * prm_item           # pos_bias double-buffer
        stream += 2 * ts * H_pad * out_item           # output double-buffer
        resident = 2 * d_tot * H_pad * prm_item       # weights (double-buffered)
        scratch = 4 * ts * H_pad * 4                  # f32 acc + LN temporaries
        if stream + resident + scratch <= _VMEM_BUDGET:
            break
        ts //= 2
    ts = max(ts, 8)

    # ---- parameters: pad / cast ONCE in the wrapper (small, reused) ---------
    def prep_w(w):
        return jnp.pad(w, ((0, 0), (0, H_pad - H))).astype(compute_dtype)

    wv = prep_w(params["wv"])
    wa = prep_w(params["wa"])
    wt = prep_w(params["wt"])
    we = prep_w(params["we"])
    bias_sum = params["bv"] + params["ba"] + params["bt"] + params["be"]
    pos_bias = params["pos_encoding"][:S] + bias_sum[None, :]          # (S, H)
    pos_bias = jnp.pad(pos_bias, ((0, 0), (0, H_pad - H))).astype(compute_dtype)
    gamma = jnp.pad(params["ln_gamma"], (0, H_pad - H)).reshape(1, H_pad)
    beta = jnp.pad(params["ln_beta"], (0, H_pad - H)).reshape(1, H_pad)

    kernel = functools.partial(mm_encoder_kernel, true_h=H,
                               compute_dtype=compute_dtype)
    cparams = pltpu.CompilerParams
    # TODO(synk): on v7x, pipeline_mode=pl.Buffered(1) on the constant-index
    # weight specs would drop the second weight buffer; footprint already fits
    # comfortably under the 56 MiB cap so it is omitted here.

    if S >= ts:
        # ---- Path A: grid (seq-tile, batch); batch innermost so pos_bias is
        #      fetched once per sequence tile. --------------------------------
        n_s = pl.cdiv(S, ts)
        S_pad = n_s * ts
        if S_pad != S:
            pad3 = ((0, 0), (0, S_pad - S), (0, 0))
            visual = jnp.pad(visual, pad3)
            audio = jnp.pad(audio, pad3)
            text = jnp.pad(text, pad3)
            engagement = jnp.pad(engagement, pad3)
            pos_bias = jnp.pad(pos_bias, ((0, S_pad - S), (0, 0)))

        def act_spec(d):
            return pl.BlockSpec((None, ts, d), lambda s, b: (b, s, 0))

        const2 = lambda s, b: (0, 0)
        out = pl.pallas_call(
            kernel,
            out_shape=jax.ShapeDtypeStruct((B, S_pad, H_pad), out_dtype),
            grid_spec=pltpu.PrefetchScalarGridSpec(
                num_scalar_prefetch=0,
                grid=(n_s, B),
                in_specs=[
                    act_spec(Dv), act_spec(Da), act_spec(Dt), act_spec(De),
                    pl.BlockSpec((Dv, H_pad), const2),
                    pl.BlockSpec((Da, H_pad), const2),
                    pl.BlockSpec((Dt, H_pad), const2),
                    pl.BlockSpec((De, H_pad), const2),
                    pl.BlockSpec((ts, H_pad), lambda s, b: (s, 0)),
                    pl.BlockSpec((1, H_pad), const2),
                    pl.BlockSpec((1, H_pad), const2),
                ],
                out_specs=pl.BlockSpec((None, ts, H_pad),
                                       lambda s, b: (b, s, 0)),
            ),
            compiler_params=cparams(
                dimension_semantics=("parallel", "parallel"),
                vmem_limit_bytes=_VMEM_LIMIT,
            ),
        )(visual, audio, text, engagement, wv, wa, wt, we, pos_bias, gamma, beta)
        if S_pad != S or H_pad != H:
            out = out[:, :S, :H]
        return out

    # ---- Path B: S < ts -> flatten (B,S) into one row axis so each grid step
    #      is a full ts-row matmul. -------------------------------------------
    M = B * S
    ts = min(ts, _round_up(M, 8))
    M_pad = _round_up(M, ts)

    def flat(x):
        x = x.reshape(M, x.shape[-1])
        if M_pad != M:
            x = jnp.pad(x, ((0, M_pad - M), (0, 0)))
        return x

    vis, aud, txt, eng = flat(visual), flat(audio), flat(text), flat(engagement)
    pos_flat = jnp.tile(pos_bias, (B, 1))                # (M, H_pad), output-sized
    if M_pad != M:
        pos_flat = jnp.pad(pos_flat, ((0, M_pad - M), (0, 0)))

    def row_spec(d):
        return pl.BlockSpec((ts, d), lambda m: (m, 0))

    const1 = lambda m: (0, 0)
    out = pl.pallas_call(
        kernel,
        out_shape=jax.ShapeDtypeStruct((M_pad, H_pad), out_dtype),
        grid_spec=pltpu.PrefetchScalarGridSpec(
            num_scalar_prefetch=0,
            grid=(M_pad // ts,),
            in_specs=[
                row_spec(Dv), row_spec(Da), row_spec(Dt), row_spec(De),
                pl.BlockSpec((Dv, H_pad), const1),
                pl.BlockSpec((Da, H_pad), const1),
                pl.BlockSpec((Dt, H_pad), const1),
                pl.BlockSpec((De, H_pad), const1),
                pl.BlockSpec((ts, H_pad), lambda m: (m, 0)),
                pl.BlockSpec((1, H_pad), const1),
                pl.BlockSpec((1, H_pad), const1),
            ],
            out_specs=pl.BlockSpec((ts, H_pad), lambda m: (m, 0)),
        ),
        compiler_params=cparams(
            dimension_semantics=("parallel",),
            vmem_limit_bytes=_VMEM_LIMIT,
        ),
    )(vis, aud, txt, eng, wv, wa, wt, we, pos_flat, gamma, beta)
    return out[:M, :H].reshape(B, S, H)


def init_params(key, Dv, Da, Dt, De, H, max_seq):
    """Deterministic parameter init mirroring nn.Linear / nn.LayerNorm shapes."""
    ks = jax.random.split(key, 9)

    def linear(kw, kb, d_in):
        bound = 1.0 / jnp.sqrt(d_in)
        w = jax.random.uniform(kw, (d_in, H), jnp.float32, -bound, bound)
        b = jax.random.uniform(kb, (H,), jnp.float32, -bound, bound)
        return w, b

    wv, bv = linear(ks[0], ks[1], Dv)
    wa, ba = linear(ks[2], ks[3], Da)
    wt, bt = linear(ks[4], ks[5], Dt)
    we, be = linear(ks[6], ks[7], De)
    pos = jax.random.normal(ks[8], (max_seq, H), jnp.float32)
    return dict(
        wv=wv, bv=bv, wa=wa, ba=ba, wt=wt, bt=bt, we=we, be=be,
        pos_encoding=pos,
        ln_gamma=jnp.ones((H,), jnp.float32),
        ln_beta=jnp.zeros((H,), jnp.float32),
    )


def reference(visual, audio, text, engagement, params):
    """Plain-JAX reference for correctness checking."""
    B, S, _ = visual.shape
    emb = (visual @ params["wv"] + params["bv"]
           + audio @ params["wa"] + params["ba"]
           + text @ params["wt"] + params["bt"]
           + engagement @ params["we"] + params["be"])
    emb = emb + params["pos_encoding"][:S][None, :, :]
    mean = emb.mean(-1, keepdims=True)
    var = ((emb - mean) ** 2).mean(-1, keepdims=True)
    return (emb - mean) / jnp.sqrt(var + LN_EPS) * params["ln_gamma"] + params["ln_beta"]


if __name__ == "__main__":
    # Small shapes consistent with the module's forward signature.
    Dv, Da, Dt, De, H = 64, 32, 48, 16, 32
    MAX_SEQ = 16

    key = jax.random.PRNGKey(0)
    k_par = jax.random.fold_in(key, 7)
    params = init_params(k_par, Dv, Da, Dt, De, H, MAX_SEQ)

    def make_inputs(B, S, salt):
        kk = jax.random.split(jax.random.fold_in(key, salt), 4)
        return (jax.random.normal(kk[0], (B, S, Dv), jnp.float32),
                jax.random.normal(kk[1], (B, S, Da), jnp.float32),
                jax.random.normal(kk[2], (B, S, Dt), jnp.float32),
                jax.random.normal(kk[3], (B, S, De), jnp.float32))

    # 1) small-S (flattened-rows) path, exact f32 compute -> tight tolerance.
    v, a, t, e = make_inputs(2, 8, salt=0)
    out = jax.block_until_ready(
        multimodal_encoder(v, a, t, e, params, compute_dtype=jnp.float32))
    ref = reference(v, a, t, e, params)
    assert out.shape == (2, 8, H)
    assert jnp.allclose(out, ref, atol=1e-4, rtol=1e-4), "f32 mismatch vs reference"

    # 2) same path with bf16 compute (default perf configuration).
    out_bf = jax.block_until_ready(multimodal_encoder(v, a, t, e, params))
    assert out_bf.shape == (2, 8, H)
    assert jnp.allclose(out_bf, ref, atol=5e-2, rtol=5e-2), "bf16 mismatch vs reference"

    # 3) (seq-tile, batch-inner) grid path (S >= ts) with bf16 compute.
    v2, a2, t2, e2 = make_inputs(2, 16, salt=1)
    out2 = jax.block_until_ready(
        multimodal_encoder(v2, a2, t2, e2, params, ts=8))
    ref2 = reference(v2, a2, t2, e2, params)
    assert out2.shape == (2, 16, H)
    assert jnp.allclose(out2, ref2, atol=5e-2, rtol=5e-2), "path-A mismatch vs reference"

    print("KERNEL_OK")
</pallas_src>

<mosaic_0001>
module attributes {stable_mosaic.version = 11 : i64} {
  func.func @mm_encoder_kernel(%arg0: i32, %arg1: memref<16x64xf32, #tpu.memory_space<vmem>>, %arg2: memref<16x32xf32, #tpu.memory_space<vmem>>, %arg3: memref<16x48xf32, #tpu.memory_space<vmem>>, %arg4: memref<16x16xf32, #tpu.memory_space<vmem>>, %arg5: memref<64x128xf32, #tpu.memory_space<vmem>>, %arg6: memref<32x128xf32, #tpu.memory_space<vmem>>, %arg7: memref<48x128xf32, #tpu.memory_space<vmem>>, %arg8: memref<16x128xf32, #tpu.memory_space<vmem>>, %arg9: memref<16x128xf32, #tpu.memory_space<vmem>>, %arg10: memref<1x128xf32, #tpu.memory_space<vmem>>, %arg11: memref<1x128xf32, #tpu.memory_space<vmem>>, %arg12: memref<16x128xf32, #tpu.memory_space<vmem>>) attributes {dimension_semantics = [#tpu.dimension_semantics<parallel>], iteration_bounds = array<i64: 1>, scalar_prefetch = 0 : i64, scratch_operands = 0 : i64, tpu.core_type = #tpu.core_type<tc>, window_params = [{transform_indices = @transform_0, window_bounds = array<i64: 16, 64>}, {transform_indices = @transform_1, window_bounds = array<i64: 16, 32>}, {transform_indices = @transform_2, window_bounds = array<i64: 16, 48>}, {transform_indices = @transform_3, window_bounds = array<i64: 16, 16>}, {pipeline_mode = #tpu.pipeline_mode<synchronous>, transform_indices = @transform_4, window_bounds = array<i64: 64, 128>}, {pipeline_mode = #tpu.pipeline_mode<synchronous>, transform_indices = @transform_5, window_bounds = array<i64: 32, 128>}, {pipeline_mode = #tpu.pipeline_mode<synchronous>, transform_indices = @transform_6, window_bounds = array<i64: 48, 128>}, {pipeline_mode = #tpu.pipeline_mode<synchronous>, transform_indices = @transform_7, window_bounds = array<i64: 16, 128>}, {transform_indices = @transform_8, window_bounds = array<i64: 16, 128>}, {pipeline_mode = #tpu.pipeline_mode<synchronous>, transform_indices = @transform_9, window_bounds = array<i64: 1, 128>}, {pipeline_mode = #tpu.pipeline_mode<synchronous>, transform_indices = @transform_10, window_bounds = array<i64: 1, 128>}, {transform_indices = @transform_11, window_bounds = array<i64: 16, 128>}]} {
    %c0 = arith.constant 0 : index
    %c0_0 = arith.constant 0 : index
    %0 = vector.load %arg1[%c0, %c0_0] : memref<16x64xf32, #tpu.memory_space<vmem>>, vector<16x64xf32>
    %c0_1 = arith.constant 0 : index
    %c0_2 = arith.constant 0 : index
    %1 = vector.load %arg5[%c0_1, %c0_2] : memref<64x128xf32, #tpu.memory_space<vmem>>, vector<64x128xf32>
    %cst = arith.constant dense<0.000000e+00> : vector<16x128xf32>
    %2 = tpu.matmul %0, %1, %cst {dimension_numbers = #tpu.dot_dimension_numbers<[1], [0], [0], [1], [0, 0, 1, 1], [], []>} : vector<16x64xf32>, vector<64x128xf32>, vector<16x128xf32> -> vector<16x128xf32>
    %c0_3 = arith.constant 0 : index
    %c0_4 = arith.constant 0 : index
    %3 = vector.load %arg2[%c0_3, %c0_4] : memref<16x32xf32, #tpu.memory_space<vmem>>, vector<16x32xf32>
    %c0_5 = arith.constant 0 : index
    %c0_6 = arith.constant 0 : index
    %4 = vector.load %arg6[%c0_5, %c0_6] : memref<32x128xf32, #tpu.memory_space<vmem>>, vector<32x128xf32>
    %cst_7 = arith.constant dense<0.000000e+00> : vector<16x128xf32>
    %5 = tpu.matmul %3, %4, %cst_7 {dimension_numbers = #tpu.dot_dimension_numbers<[1], [0], [0], [1], [0, 0, 1, 1], [], []>} : vector<16x32xf32>, vector<32x128xf32>, vector<16x128xf32> -> vector<16x128xf32>
    %6 = arith.addf %2, %5 : vector<16x128xf32>
    %c0_8 = arith.constant 0 : index
    %c0_9 = arith.constant 0 : index
    %7 = vector.load %arg3[%c0_8, %c0_9] : memref<16x48xf32, #tpu.memory_space<vmem>>, vector<16x48xf32>
    %c0_10 = arith.constant 0 : index
    %c0_11 = arith.constant 0 : index
    %8 = vector.load %arg7[%c0_10, %c0_11] : memref<48x128xf32, #tpu.memory_space<vmem>>, vector<48x128xf32>
    %cst_12 = arith.constant dense<0.000000e+00> : vector<16x128xf32>
    %9 = tpu.matmul %7, %8, %cst_12 {dimension_numbers = #tpu.dot_dimension_numbers<[1], [0], [0], [1], [0, 0, 1, 1], [], []>} : vector<16x48xf32>, vector<48x128xf32>, vector<16x128xf32> -> vector<16x128xf32>
    %10 = arith.addf %6, %9 : vector<16x128xf32>
    %c0_13 = arith.constant 0 : index
    %c0_14 = arith.constant 0 : index
    %11 = vector.load %arg4[%c0_13, %c0_14] : memref<16x16xf32, #tpu.memory_space<vmem>>, vector<16x16xf32>
    %c0_15 = arith.constant 0 : index
    %c0_16 = arith.constant 0 : index
    %12 = vector.load %arg8[%c0_15, %c0_16] : memref<16x128xf32, #tpu.memory_space<vmem>>, vector<16x128xf32>
    %cst_17 = arith.constant dense<0.000000e+00> : vector<16x128xf32>
    %13 = tpu.matmul %11, %12, %cst_17 {dimension_numbers = #tpu.dot_dimension_numbers<[1], [0], [0], [1], [0, 0, 1, 1], [], []>} : vector<16x16xf32>, vector<16x128xf32>, vector<16x128xf32> -> vector<16x128xf32>
    %14 = arith.addf %10, %13 : vector<16x128xf32>
    %c0_18 = arith.constant 0 : index
    %c0_19 = arith.constant 0 : index
    %15 = vector.load %arg9[%c0_18, %c0_19] : memref<16x128xf32, #tpu.memory_space<vmem>>, vector<16x128xf32>
    %16 = arith.addf %14, %15 : vector<16x128xf32>
    %cst_20 = arith.constant dense<0.000000e+00> : vector<16xf32>
    %17 = vector.multi_reduction <add>, %16, %cst_20 [1] : vector<16x128xf32> to vector<16xf32>
    %18 = vector.shape_cast %17 : vector<16xf32> to vector<16x1xf32>
    %cst_21 = arith.constant 3.125000e-02 : f32
    %19 = vector.broadcast %cst_21 : f32 to vector<16x1xf32>
    %20 = arith.mulf %18, %19 : vector<16x1xf32>
    %21 = arith.mulf %16, %16 : vector<16x128xf32>
    %cst_22 = arith.constant dense<0.000000e+00> : vector<16xf32>
    %22 = vector.multi_reduction <add>, %21, %cst_22 [1] : vector<16x128xf32> to vector<16xf32>
    %23 = vector.shape_cast %22 : vector<16xf32> to vector<16x1xf32>
    %cst_23 = arith.constant 3.125000e-02 : f32
    %24 = vector.broadcast %cst_23 : f32 to vector<16x1xf32>
    %25 = arith.mulf %23, %24 : vector<16x1xf32>
    %26 = arith.mulf %20, %20 : vector<16x1xf32>
    %27 = arith.subf %25, %26 : vector<16x1xf32>
    %28 = vector.broadcast %20 : vector<16x1xf32> to vector<16x128xf32>
    %29 = arith.subf %16, %28 : vector<16x128xf32>
    %cst_24 = arith.constant 9.99999974E-6 : f32
    %30 = vector.broadcast %cst_24 : f32 to vector<16x1xf32>
    %31 = arith.addf %27, %30 : vector<16x1xf32>
    %32 = math.rsqrt %31 : vector<16x1xf32>
    %33 = vector.broadcast %32 : vector<16x1xf32> to vector<16x128xf32>
    %34 = arith.mulf %29, %33 : vector<16x128xf32>
    %c0_25 = arith.constant 0 : index
    %c0_26 = arith.constant 0 : index
    %35 = vector.load %arg10[%c0_25, %c0_26] : memref<1x128xf32, #tpu.memory_space<vmem>>, vector<1x128xf32>
    %36 = vector.broadcast %35 : vector<1x128xf32> to vector<16x128xf32>
    %37 = arith.mulf %34, %36 : vector<16x128xf32>
    %c0_27 = arith.constant 0 : index
    %c0_28 = arith.constant 0 : index
    %38 = vector.load %arg11[%c0_27, %c0_28] : memref<1x128xf32, #tpu.memory_space<vmem>>, vector<1x128xf32>
    %39 = vector.broadcast %38 : vector<1x128xf32> to vector<16x128xf32>
    %40 = arith.addf %37, %39 : vector<16x128xf32>
    %c0_29 = arith.constant 0 : index
    %c0_30 = arith.constant 0 : index
    %41 = vector.load %arg12[%c0_29, %c0_30] : memref<16x128xf32, #tpu.memory_space<vmem>>, vector<16x128xf32>
    tpu.vector_store %arg12[%c0_29, %c0_30], %40 {strides = array<i32>} : memref<16x128xf32, #tpu.memory_space<vmem>>, vector<16x128xf32>,
    return
  }
  func.func @transform_0(%arg0: i32) -> (i32, i32) {
    %c0_i32 = arith.constant 0 : i32
    %c0_i32_0 = arith.constant 0 : i32
    return %arg0, %c0_i32 : i32, i32
  }
  func.func @transform_1(%arg0: i32) -> (i32, i32) {
    %c0_i32 = arith.constant 0 : i32
    %c0_i32_0 = arith.constant 0 : i32
    return %arg0, %c0_i32 : i32, i32
  }
  func.func @transform_2(%arg0: i32) -> (i32, i32) {
    %c0_i32 = arith.constant 0 : i32
    %c0_i32_0 = arith.constant 0 : i32
    return %arg0, %c0_i32 : i32, i32
  }
  func.func @transform_3(%arg0: i32) -> (i32, i32) {
    %c0_i32 = arith.constant 0 : i32
    %c0_i32_0 = arith.constant 0 : i32
    return %arg0, %c0_i32 : i32, i32
  }
  func.func @transform_4(%arg0: i32) -> (i32, i32) {
    %c0_i32 = arith.constant 0 : i32
    %c0_i32_0 = arith.constant 0 : i32
    %c0_i32_1 = arith.constant 0 : i32
    return %c0_i32, %c0_i32_0 : i32, i32
  }
  func.func @transform_5(%arg0: i32) -> (i32, i32) {
    %c0_i32 = arith.constant 0 : i32
    %c0_i32_0 = arith.constant 0 : i32
    %c0_i32_1 = arith.constant 0 : i32
    return %c0_i32, %c0_i32_0 : i32, i32
  }
  func.func @transform_6(%arg0: i32) -> (i32, i32) {
    %c0_i32 = arith.constant 0 : i32
    %c0_i32_0 = arith.constant 0 : i32
    %c0_i32_1 = arith.constant 0 : i32
    return %c0_i32, %c0_i32_0 : i32, i32
  }
  func.func @transform_7(%arg0: i32) -> (i32, i32) {
    %c0_i32 = arith.constant 0 : i32
    %c0_i32_0 = arith.constant 0 : i32
    %c0_i32_1 = arith.constant 0 : i32
    return %c0_i32, %c0_i32_0 : i32, i32
  }
  func.func @transform_8(%arg0: i32) -> (i32, i32) {
    %c0_i32 = arith.constant 0 : i32
    %c0_i32_0 = arith.constant 0 : i32
    return %arg0, %c0_i32 : i32, i32
  }
  func.func @transform_9(%arg0: i32) -> (i32, i32) {
    %c0_i32 = arith.constant 0 : i32
    %c0_i32_0 = arith.constant 0 : i32
    %c0_i32_1 = arith.constant 0 : i32
    return %c0_i32, %c0_i32_0 : i32, i32
  }
  func.func @transform_10(%arg0: i32) -> (i32, i32) {
    %c0_i32 = arith.constant 0 : i32
    %c0_i32_0 = arith.constant 0 : i32
    %c0_i32_1 = arith.constant 0 : i32
    return %c0_i32, %c0_i32_0 : i32, i32
  }
  func.func @transform_11(%arg0: i32) -> (i32, i32) {
    %c0_i32 = arith.constant 0 : i32
    %c0_i32_0 = arith.constant 0 : i32
    return %arg0, %c0_i32 : i32, i32
  }
}

</mosaic_0001>

<bundles_post_ra>
// kernel: tpu_custom_call.1
= control target key start
LH: loop header
LB: loop body
LE: loop exit
PB: predicated region body
PF: predicated region fallthrough
CT: control target
= control target key end

     0   :  { %16 = vsyncpa [#allocation3], 0  ;;  %s1192_s0 = inlined_call_operand.hbm [shape: f32[16,64], index: 0, kind: input, shape index: {}]   ;;  %s1193_s1 = inlined_call_operand.hbm [shape: f32[16,32], index: 1, kind: input, shape index: {}]   ;;  %s1194_s2 = inlined_call_operand.hbm [shape: f32[16,48], index: 2, kind: input, shape index: {}]   ;;  %s1195_s3 = inlined_call_operand.hbm [shape: f32[16,16], index: 3, kind: input, shape index: {}]   ;;  %s1196_s4 = inlined_call_operand.hbm [shape: f32[64,128], index: 4, kind: input, shape index: {}]   ;;  %s1197_s5 = inlined_call_operand.hbm [shape: f32[32,128], index: 5, kind: input, shape index: {}]   ;;  %s1198_s6 = inlined_call_operand.hbm [shape: f32[48,128], index: 6, kind: input, shape index: {}]   ;;  %s1199_s7 = inlined_call_operand.vmem [shape: f32[16,128], index: 7, kind: input, shape index: {}]   ;;  %s1200_s8 = inlined_call_operand.hbm [shape: f32[16,128], index: 8, kind: input, shape index: {}]   ;;  %s1201_s9 = inlined_call_operand.vmem [shape: f32[1,128], index: 9, kind: input, shape index: {}]   ;;  %s1202_s10 = inlined_call_operand.vmem [shape: f32[1,128], index: 10, kind: input, shape index: {}]   ;;  %s1203_s11 = inlined_call_operand.hbm [shape: f32[16,128], index: 11, kind: output, shape index: {}]  }
   0x1   :  { %17 = vsyncpa [#allocation6], 0 }
   0x2   :  { %18 = vsyncpa [#allocation9], 0 }
   0x3   :  { %19 = vsyncpa [#allocation12], 0 }
   0x4   :  { %20 = vsyncpa [#allocation15], 0 }
   0x5   :  { %21 = vsyncpa [#allocation4], 0  ;;  %s940_s17 = smov [#allocation5]   ;;  %s941_s19 = smov [#allocation8]  }
   0x6   :  { %s39_s18 = sshll.u32 %s940_s17, 4  ;;  %s63_s20 = sshll.u32 %s941_s19, 4  ;;  %s40_s18 = int_to_ptr.vmem [resolvable:$true] %s39_s18  ;;  %s1011_s20 = int_to_ptr.vmem [resolvable:$true] %s63_s20 }
   0x7   :  { %s730_s23 = scalar_lea.hbm %s1193_s1, 256 }
   0x8   :  { %p731_p0 = scmp.ne.s32.totalorder %s1193_s1, %s730_s23  ;;  %p734_p1 = scmp.lt.u32.totalorder %s730_s23, %s1193_s1 }
   0xa   :  { %p736_p2 = pnand %p734_p1, %p731_p0 }
   0xc   :  { %739 = shalt.err (!%p736_p2)
}
   0xd   :  { %s740_s28 = scalar_lea.vmem %s40_s18, 256  ;;  %p745_p4 = scmp.lt.s32.totalorder %s40_s18, %s40_s18 }
   0xe   :  { %p741_p3 = scmp.ne.s32.totalorder %s40_s18, %s740_s28  ;;  %p746_p5 = scmp.lt.s32.totalorder %s740_s28, %s740_s28 }
  0x10   :  { %p747_p6 = por %p746_p5, %p745_p4 }
  0x12   :  { %p748_p7 = pnand %p747_p6, %p741_p3 }
  0x14   :  { %751 = shalt.err (!%p748_p7)
}
  0x15   :  { %s942_s29 = smov 128   ;;  %s943_s30 = smov 8  }
  0x16   :  { %45 = dma.hbm_to_vmem [thread:$0]  %s1193_s1, 256, %s40_s18, [#allocation6], %s942_s29, %s942_s29, %s943_s30  }
  0x17   :  { %s752_s16 = scalar_lea.hbm %s1195_s3, 256 }
  0x18   :  { %p753_p8 = scmp.ne.s32.totalorder %s1195_s3, %s752_s16  ;;  %p756_p9 = scmp.lt.u32.totalorder %s752_s16, %s1195_s3 }
  0x1a   :  { %p758_p10 = pnand %p756_p9, %p753_p8 }
  0x1c   :  { %761 = shalt.err (!%p758_p10)
}
  0x1d   :  { %s762_s23 = scalar_lea.vmem %s1011_s20, 256  ;;  %p767_p12 = scmp.lt.s32.totalorder %s1011_s20, %s1011_s20 }
  0x1e   :  { %p763_p11 = scmp.ne.s32.totalorder %s1011_s20, %s762_s23  ;;  %p768_p13 = scmp.lt.s32.totalorder %s762_s23, %s762_s23 }
  0x20   :  { %p769_p0 = por %p768_p13, %p767_p12 }
  0x22   :  { %p770_p1 = pnand %p769_p0, %p763_p11 }
  0x24   :  { %773 = shalt.err (!%p770_p1)
}
  0x25   :  { %69 = dma.hbm_to_vmem [thread:$0]  %s1195_s3, 256, %s1011_s20, [#allocation9], %s942_s29, %s942_s29, %s943_s30  }
  0x26   :  { %s944_s24 = smov [#allocation11]   ;;  %s945_s26 = smov [#allocation2]  }
  0x27   :  { %s87_s25 = sshll.u32 %s944_s24, 4  ;;  %s27_s27 = sshll.u32 %s945_s26, 4  ;;  %s88_s25 = int_to_ptr.vmem [resolvable:$true] %s87_s25  ;;  %s1048_s27 = int_to_ptr.vmem [resolvable:$true] %s27_s27 }
  0x28   :  { %s774_s13 = scalar_lea.hbm %s1197_s5, 512 }
  0x29   :  { %p775_p2 = scmp.ne.s32.totalorder %s1197_s5, %s774_s13  ;;  %p778_p3 = scmp.lt.u32.totalorder %s774_s13, %s1197_s5 }
  0x2b   :  { %p780_p4 = pnand %p778_p3, %p775_p2 }
  0x2d   :  { %783 = shalt.err (!%p780_p4)
}
  0x2e   :  { %s784_s3 = scalar_lea.vmem %s88_s25, 512  ;;  %p789_p6 = scmp.lt.s32.totalorder %s88_s25, %s88_s25 }
  0x2f   :  { %p785_p5 = scmp.ne.s32.totalorder %s88_s25, %s784_s3  ;;  %p790_p7 = scmp.lt.s32.totalorder %s784_s3, %s784_s3 }
  0x31   :  { %p791_p8 = por %p790_p7, %p789_p6 }
  0x33   :  { %p792_p9 = pnand %p791_p8, %p785_p5 }
  0x35   :  { %795 = shalt.err (!%p792_p9)
}
  0x36   :  { %93 = dma.hbm_to_vmem [thread:$0]  %s1197_s5, 512, %s88_s25, [#allocation12], %s942_s29, %s942_s29, %s943_s30  }
  0x37   :  { %s796_s23 = scalar_lea.hbm %s1192_s0, 256 }
  0x38   :  { %p797_p10 = scmp.ne.s32.totalorder %s1192_s0, %s796_s23  ;;  %p800_p11 = scmp.lt.u32.totalorder %s796_s23, %s1192_s0 }
  0x3a   :  { %p802_p12 = pnand %p800_p11, %p797_p10 }
  0x3c   :  { %805 = shalt.err (!%p802_p12)
}
  0x3d   :  { %s806_s28 = scalar_lea.vmem %s1048_s27, 256  ;;  %p811_p0 = scmp.lt.s32.totalorder %s1048_s27, %s1048_s27 }
  0x3e   :  { %p807_p13 = scmp.ne.s32.totalorder %s1048_s27, %s806_s28  ;;  %p812_p1 = scmp.lt.s32.totalorder %s806_s28, %s806_s28 }
  0x40   :  { %p813_p2 = por %p812_p1, %p811_p0 }
  0x42   :  { %p814_p3 = pnand %p813_p2, %p807_p13 }
  0x44   :  { %817 = shalt.err (!%p814_p3)
}
  0x45   :  { %33 = dma.hbm_to_vmem [thread:$0]  %s1192_s0, 256, %s1048_s27, [#allocation3], %s942_s29, %s942_s29, %s943_s30  }
  0x46   :  { %s946_s12 = smov [#allocation7]   ;;  %s947_s14 = smov [#allocation10]  }
  0x47   :  { %s51_s13 = sshll.u32 %s946_s12, 4  ;;  %s75_s15 = sshll.u32 %s947_s14, 4  ;;  %s52_s13 = int_to_ptr.vmem [resolvable:$true] %s51_s13  ;;  %s1085_s15 = int_to_ptr.vmem [resolvable:$true] %s75_s15 }
  0x48   :  { %s818_s3 = scalar_lea.hbm %s1194_s2, 256 }
  0x49   :  { %p819_p4 = scmp.ne.s32.totalorder %s1194_s2, %s818_s3  ;;  %p822_p5 = scmp.lt.u32.totalorder %s818_s3, %s1194_s2 }
  0x4b   :  { %p824_p6 = pnand %p822_p5, %p819_p4 }
  0x4d   :  { %827 = shalt.err (!%p824_p6)
}
  0x4e   :  { %s828_s0 = scalar_lea.vmem %s52_s13, 256  ;;  %p833_p8 = scmp.lt.s32.totalorder %s52_s13, %s52_s13 }
  0x4f   :  { %p829_p7 = scmp.ne.s32.totalorder %s52_s13, %s828_s0  ;;  %p834_p9 = scmp.lt.s32.totalorder %s828_s0, %s828_s0 }
  0x51   :  { %p835_p10 = por %p834_p9, %p833_p8 }
  0x53   :  { %p836_p11 = pnand %p835_p10, %p829_p7 }
  0x55   :  { %839 = shalt.err (!%p836_p11)
}
  0x56   :  { %57 = dma.hbm_to_vmem [thread:$0]  %s1194_s2, 256, %s52_s13, [#allocation6], %s942_s29, %s942_s29, %s943_s30  }
  0x57   :  { %s840_s24 = scalar_lea.hbm %s1196_s4, 1024 }
  0x58   :  { %p841_p12 = scmp.ne.s32.totalorder %s1196_s4, %s840_s24  ;;  %p844_p13 = scmp.lt.u32.totalorder %s840_s24, %s1196_s4 }
  0x5a   :  { %p846_p0 = pnand %p844_p13, %p841_p12 }
  0x5c   :  { %849 = shalt.err (!%p846_p0)
}
  0x5d   :  { %s850_s12 = scalar_lea.vmem %s1085_s15, 1024  ;;  %p855_p2 = scmp.lt.s32.totalorder %s1085_s15, %s1085_s15 }
  0x5e   :  { %p851_p1 = scmp.ne.s32.totalorder %s1085_s15, %s850_s12  ;;  %p856_p3 = scmp.lt.s32.totalorder %s850_s12, %s850_s12 }
  0x60   :  { %p857_p4 = por %p856_p3, %p855_p2 }
  0x62   :  { %p858_p5 = pnand %p857_p4, %p851_p1 }
  0x64   :  { %861 = shalt.err (!%p858_p5)
}
  0x65   :  { %81 = dma.hbm_to_vmem [thread:$0]  %s1196_s4, 1024, %s1085_s15, [#allocation9], %s942_s29, %s942_s29, %s943_s30  }
  0x66   :  { %s948_s14 = smov [#allocation13]   ;;  %s949_s17 = smov [#allocation14]  }
  0x67   :  { %s99_s16 = sshll.u32 %s948_s14, 4  ;;  %s113_s3 = sshll.u32 %s949_s17, 4  ;;  %s100_s16 = int_to_ptr.vmem [resolvable:$true] %s99_s16  ;;  %s1122_s3 = int_to_ptr.vmem [resolvable:$true] %s113_s3 }
  0x68   :  { %s862_s21 = scalar_lea.hbm %s1198_s6, 768 }
  0x69   :  { %p863_p6 = scmp.ne.s32.totalorder %s1198_s6, %s862_s21  ;;  %p866_p7 = scmp.lt.u32.totalorder %s862_s21, %s1198_s6 }
  0x6b   :  { %p868_p8 = pnand %p866_p7, %p863_p6 }
  0x6d   :  { %871 = shalt.err (!%p868_p8)
}
  0x6e   :  { %s872_s4 = scalar_lea.vmem %s100_s16, 768  ;;  %p877_p10 = scmp.lt.s32.totalorder %s100_s16, %s100_s16 }
  0x6f   :  { %p873_p9 = scmp.ne.s32.totalorder %s100_s16, %s872_s4  ;;  %p878_p11 = scmp.lt.s32.totalorder %s872_s4, %s872_s4 }
  0x71   :  { %p879_p12 = por %p878_p11, %p877_p10 }
  0x73   :  { %p880_p13 = pnand %p879_p12, %p873_p9 }
  0x75   :  { %883 = shalt.err (!%p880_p13)
}
  0x76   :  { %105 = dma.hbm_to_vmem [thread:$0]  %s1198_s6, 768, %s100_s16, [#allocation12], %s942_s29, %s942_s29, %s943_s30  }
  0x77   :  { %s884_s26 = scalar_lea.hbm %s1200_s8, 256 }
  0x78   :  { %p885_p0 = scmp.ne.s32.totalorder %s1200_s8, %s884_s26  ;;  %p888_p1 = scmp.lt.u32.totalorder %s884_s26, %s1200_s8 }
  0x7a   :  { %p890_p2 = pnand %p888_p1, %p885_p0 }
  0x7c   :  { %893 = shalt.err (!%p890_p2)
}
  0x7d   :  { %s894_s2 = scalar_lea.vmem %s1122_s3, 256  ;;  %p899_p4 = scmp.lt.s32.totalorder %s1122_s3, %s1122_s3 }
  0x7e   :  { %p895_p3 = scmp.ne.s32.totalorder %s1122_s3, %s894_s2  ;;  %p900_p5 = scmp.lt.s32.totalorder %s894_s2, %s894_s2 }
  0x80   :  { %p901_p6 = por %p900_p5, %p899_p4 }
  0x82   :  { %p902_p7 = pnand %p901_p6, %p895_p3 }
  0x84   :  { %905 = shalt.err (!%p902_p7)
}
  0x85   :  { %119 = dma.hbm_to_vmem [thread:$0]  %s1200_s8, 256, %s1122_s3, [#allocation15], %s942_s29, %s942_s29, %s943_s30  }
  0x86   :  { %928 = dma.done.wait [#allocation3], 256  }
  0x87   :  { %929 = vsyncadd [#allocation3], 4294967040 }
  0x88   :  { %930 = dma.done.wait [#allocation6], 512  }
  0x89   :  { %931 = vsyncadd [#allocation6], 4294966784 }
  0x8a   :  { %932 = dma.done.wait [#allocation9], 1280  }
  0x8b   :  { %933 = vsyncadd [#allocation9], 4294966016 }
  0x8c   :  { %934 = dma.done.wait [#allocation12], 1280  }
  0x8d   :  { %935 = vsyncadd [#allocation12], 4294966016 }
  0x8e   :  { %936 = dma.done.wait [#allocation15], 256  }
  0x8f   :  { %937 = vsyncadd [#allocation15], 4294967040  ;;  %v160_v0 = vld [vmem:[#allocation11] sm:$0xff]  ;;  %v161_v1 = vld [vmem:[#allocation11 + $0x8] sm:$0xff]  ;;  %vm164_vm0 = vcmask 261120   ;;  %vm246_vm1 = vcmask 523264  }
  0x90   :  { %v150_v2 = vld [vmem:[#allocation10] sm:$0xff]  ;;  %v669_v3 = vpack.c.bf16 %v161_v1, %v160_v0  ;;  %v151_v4 = vld [vmem:[#allocation10 + $0x8] sm:$0xff]  ;;  %v162_v5 = vld [vmem:[#allocation11 + $0x10] sm:$0xff]  ;;  %vm336_vm2 = vcmask 392192   ;;  %vm424_vm3 = vcmask 130048   ;;  %s950_s21 = smov [#allocation16]  }
  0x91   :  { %v163_v6 = vld [vmem:[#allocation11 + $0x18] sm:$0xff]  ;;  %v677_v7 = vpack.c.bf16 %v151_v4, %v150_v2  ;;  %v152_v9 = vld [vmem:[#allocation10 + $0x10] sm:$0xff]  ;;  %v154_v13 = vld [vmem:[#allocation10 + $0x20] sm:$0xff]  ;;  %s563_s22 = sshll.u32 %s950_s21, 4  ;;  %s564_s22 = int_to_ptr.vmem [resolvable:$true] %s563_s22 }
  0x92   :  { %v673_v8 = vpack.c.bf16 %v163_v6, %v162_v5  ;;  %v153_v10 = vld [vmem:[#allocation10 + $0x18] sm:$0xff]  ;;  %v158_v11 = vld [vmem:[#allocation5] sm:$0xff]  ;;  %670 = vmatprep.subr.bf16.mxu0 %v669_v3  ;;  %v155_v14 = vld [vmem:[#allocation10 + $0x28] sm:$0xff]  ;;  %s906_s0 = scalar_lea.vmem %s564_s22, 256  ;;  %p911_p9 = scmp.lt.s32.totalorder %s564_s22, %s564_s22 }
  0x93   :  { %v681_v12 = vpack.c.bf16 %v153_v10, %v152_v9  ;;  %625 = vmatprep.mubr.msk.f32.mxu0 %vm164_vm0, %v158_v11  ;;  %678 = vmatprep.subr.bf16.mxu1 %v677_v7  ;;  %v330_v15 = vld [vmem:[#allocation13] sm:$0xff]  ;;  %v331_v16 = vld [vmem:[#allocation13 + $0x8] sm:$0xff]  ;;  %v685_v18 = vpack.c.bf16 %v155_v14, %v154_v13  ;;  %v332_v19 = vld [vmem:[#allocation13 + $0x10] sm:$0xff]  ;;  %p907_p8 = scmp.ne.s32.totalorder %s564_s22, %s906_s0  ;;  %p912_p10 = scmp.lt.s32.totalorder %s906_s0, %s906_s0 }
  0x94   :  { %672 = vmatpush3.bf16.msra.mxu0 %v669_v3  ;;  %680 = vmatpush3.bf16.msra.mxu1 %v677_v7  ;;  %v693_v17 = vpack.c.bf16 %v331_v16, %v330_v15  ;;  %v333_v20 = vld [vmem:[#allocation13 + $0x18] sm:$0xff]  ;;  %v148_v21 = vld [vmem:[#allocation2] sm:$0xff]  ;;  %v156_v22 = vld [vmem:[#allocation10 + $0x30] sm:$0xff] }
  0x95   :  { %674 = vmatprep.subr.bf16.mxu0 %v673_v8  ;;  %682 = vmatprep.subr.bf16.mxu1 %v681_v12  ;;  %v157_v23 = vld [vmem:[#allocation10 + $0x38] sm:$0xff]  ;;  %v697_v25 = vpack.c.bf16 %v333_v20, %v332_v19  ;;  %v328_v26 = vld [vmem:[#allocation7] sm:$0xff]  ;;  %v335_v29 = vld [vmem:[#allocation13 + $0x28] sm:$0xff]  ;;  %p913_p11 = por %p912_p10, %p911_p9 }
  0x96   :  { %644 = vmatprep.mubr.msk.f32.mxu1 %vm246_vm1, %v148_v21  ;;  %v159_v24 = vld [vmem:[#allocation5 + $0x8] sm:$0xff]  ;;  %v689_v27 = vpack.c.bf16 %v157_v23, %v156_v22  ;;  %v334_v28 = vld [vmem:[#allocation13 + $0x20] sm:$0xff]  ;;  %v423_v31 = vld [vmem:[%s1199_s7 + $0x8] sm:$0xff] }
  0x97   :  { %v422_v30 = vld [vmem:[%s1199_s7] sm:$0xff]  ;;  %v701_v32 = vpack.c.bf16 %v335_v29, %v334_v28  ;;  %v149_v34 = vld [vmem:[#allocation2 + $0x8] sm:$0xff]  ;;  %v420_v35 = vld [vmem:[#allocation8] sm:$0xff]  ;;  %p914_p12 = pnand %p913_p11, %p907_p8 }
  0x98   :  { %676 = vmatpush3.bf16.msra.mxu0 %v673_v8  ;;  %684 = vmatpush3.bf16.msra.mxu1 %v681_v12  ;;  %v705_v33 = vpack.c.bf16 %v423_v31, %v422_v30  ;;  %v329_v36 = vld [vmem:[#allocation7 + $0x8] sm:$0xff]  ;;  %v421_v37 = vld [vmem:[#allocation8 + $0x8] sm:$0xff]  ;;  %v508_v51 = vld [vmem:[#allocation14] sm:$0xff] }
  0x99   :  { %694 = vmatprep.subr.bf16.mxu0 %v693_v17  ;;  %686 = vmatprep.subr.bf16.mxu1 %v685_v18  ;;  %v509_v53 = vld [vmem:[#allocation14 + $0x8] sm:$0xff]  ;;  %v587_v10 = vld [vmem:[%s1201_s9] ss:$0 sm:$0xff] }
  0x9a   :  { %v588_v12 = vld [vmem:[%s1202_s10] ss:$0 sm:$0xff] }
  0x9b   :  { %626 = vmatmul.mubr.msk.f32.vlgmr.msra.gmra.mrb[0].mxu0 %vm164_vm0, %v159_v24 }
  0x9c   :  { %696 = vmatpush3.bf16.msra.mxu0 %v693_v17  ;;  %659 = vmatprep.mubr.msk.f32.mxu0 %vm336_vm2, %v328_v26 }
  0x9d   :  { %688 = vmatpush3.bf16.msra.mxu1 %v685_v18  ;;  %698 = vmatprep.subr.bf16.mxu0 %v697_v25 }
  0x9e   :  { %690 = vmatprep.subr.bf16.mxu1 %v689_v27 }
  0xa0   :  { %700 = vmatpush3.bf16.msra.mxu0 %v697_v25 }
  0xa1   :  { %692 = vmatpush3.bf16.msra.mxu1 %v689_v27  ;;  %702 = vmatprep.subr.bf16.mxu0 %v701_v32 }
  0xa2   :  { %706 = vmatprep.subr.bf16.mxu1 %v705_v33 }
  0xa4   :  { %645 = vmatmul.mubr.msk.f32.vlgmr.msra.gmra.mrb[0].mxu1 %vm246_vm1, %v149_v34  ;;  %704 = vmatpush3.bf16.msra.mxu0 %v701_v32 }
  0xa5   :  { %708 = vmatpush3.bf16.msra.mxu1 %v705_v33  ;;  %666 = vmatprep.mubr.msk.f32.mxu1 %vm424_vm3, %v420_v35 }
  0xa7   :  { %660 = vmatmul.mubr.msk.f32.vlgmr.msra.gmra.mrb[2].mxu0 %vm336_vm2, %v329_v36 }
  0xa8   :  { %667 = vmatmul.mubr.msk.f32.vlgmr.msra.gmra.mrb[2].mxu1 %vm424_vm3, %v421_v37 }
 0x16e   :  { %v627_v38 = vpop.f32.mrb[0].mxu0 }
 0x16f   :  { %v237_v39 = vpop.f32.mrb[1].mxu0 }
 0x177   :  { %v646_v40 = vpop.f32.mrb[0].mxu1 }
 0x178   :  { %v325_v41 = vadd.f32 %v646_v40, %v627_v38  ;;  %v319_v42 = vpop.f32.mrb[1].mxu1 }
 0x179   :  { %v320_v43 = vadd.f32 %v319_v42, %v237_v39 }
 0x17a   :  { %v661_v44 = vpop.f32.mrb[2].mxu0 }
 0x17b   :  { %v419_v45 = vadd.f32 %v661_v44, %v325_v41  ;;  %v409_v46 = vpop.f32.mrb[3].mxu0  ;;  %v668_v47 = vpop.f32.mrb[2].mxu1 }
 0x17c   :  { %v418_v48 = vadd.f32 %v409_v46, %v320_v43  ;;  %v497_v49 = vpop.f32.mrb[3].mxu1 }
 0x17d   :  { %v507_v50 = vadd.f32 %v668_v47, %v419_v45 }
 0x17e   :  { %v506_v52 = vadd.f32 %v497_v49, %v418_v48 }
 0x17f   :  { %v511_v55 = vadd.f32 %v509_v53, %v507_v50 }
 0x180   :  { %v510_v54 = vadd.f32 %v508_v51, %v506_v52 }
 0x181   :  { %v519_v57 = vmul.f32 %v511_v55, %v511_v55 }
 0x182   :  { %512 = vadd.xlane.f32.xlu0 %v510_v54  ;;  %v518_v56 = vmul.f32 %v510_v54, %v510_v54 }
 0x184   :  { %520 = vadd.xlane.f32.xlu1 %v518_v56 }
 0x186   :  { %514 = vadd.xlane.f32.xlu0 %v511_v55 }
 0x188   :  { %522 = vadd.xlane.f32.xlu1 %v519_v57 }
 0x20f   :  { %v513_v58 = vpop.xlane.xlu0 %512 }
 0x210   :  { %v516_v59 = vmul.f32 0.03125, %v513_v58 }
 0x211   :  { %v521_v60 = vpop.xlane.xlu1 %520 }
 0x212   :  { %v526_v61 = vmul.f32 %v516_v59, %v516_v59  ;;  %v524_v62 = vmul.f32 0.03125, %v521_v60  ;;  %v530_v8 = vsub.f32 %v510_v54, %v516_v59 }
 0x213   :  { %v515_v63 = vpop.xlane.xlu0 %514 }
 0x214   :  { %v528_v0 = vsub.f32 %v524_v62, %v526_v61  ;;  %v517_v1 = vmul.f32 0.03125, %v515_v63 }
 0x215   :  { %v523_v2 = vpop.xlane.xlu1 %522 }
 0x216   :  { %v532_v3 = vadd.f32 1e-05, %v528_v0  ;;  %v527_v4 = vmul.f32 %v517_v1, %v517_v1  ;;  %v525_v5 = vmul.f32 0.03125, %v523_v2  ;;  %v531_v13 = vsub.f32 %v511_v55, %v517_v1 }
 0x218   :  { %726 = vrsqrt.f32 %v532_v3  ;;  %v529_v6 = vsub.f32 %v525_v5, %v527_v4 }
 0x21a   :  { %v533_v7 = vadd.f32 1e-05, %v529_v6 }
 0x21c   :  { %728 = vrsqrt.f32 %v533_v7 }
 0x222   :  { %v727_v9 = vpop.eup %726 }
 0x223   :  { %v536_v11 = vmul.f32 %v727_v9, %v530_v8 }
 0x225   :  { %v545_v14 = vmul.f32 %v587_v10, %v536_v11 }
 0x226   :  { %v729_v15 = vpop.eup %728 }
 0x227   :  { %v537_v16 = vmul.f32 %v729_v15, %v531_v13  ;;  %v554_v17 = vadd.f32 %v588_v12, %v545_v14 }
 0x229   :  { %v546_v18 = vmul.f32 %v587_v10, %v537_v16  ;;  %556 = vst [vmem:[#allocation16] sm:$0xff] %v554_v17 }
 0x22b   :  { %v555_v19 = vadd.f32 %v588_v12, %v546_v18 }
 0x22d   :  { %557 = vst [vmem:[#allocation16 + $0x8] sm:$0xff] %v555_v19 }
 0x22e   :  { %917 = shalt.err (!%p914_p12)
}
 0x22f   :  { %s918_s27 = scalar_lea.hbm %s1203_s11, 256 }
 0x230   :  { %p919_p13 = scmp.ne.s32.totalorder %s1203_s11, %s918_s27  ;;  %p922_p0 = scmp.lt.u32.totalorder %s918_s27, %s1203_s11 }
 0x232   :  { %p924_p1 = pnand %p922_p0, %p919_p13 }
 0x234   :  { %927 = shalt.err (!%p924_p1)
}
 0x235   :  { %569 = dma.vmem_to_hbm [thread:$0]  %s564_s22, 256, %s1203_s11, [#allocation4], %s942_s29, %s942_s29, %s943_s30  }
 0x236   :  { %938 = dma.done.wait [#allocation4], 256  }
 0x237   :  { %939 = vsyncadd [#allocation4], 4294967040 }
 0x238   :  { %573 = vsyncpa [#allocation3], 1 }
 0x239   :  { %574 = vsyncpa [#allocation6], 1 }
 0x23a   :  { %575 = vsyncpa [#allocation9], 1 }
 0x23b   :  { %576 = vsyncpa [#allocation12], 1 }
 0x23c   :  { %577 = vsyncpa [#allocation15], 1 }
 0x23d   :  { %578 = vsyncpa [#allocation4], 1 }

</bundles_post_ra>
